<compile_context>
chip_gen: v7x
topology: tpu7x:2x2x1
jax: 0.10.0
libtpu: 0.0.40
codegen_flags: <defaults>
</compile_context>

<pallas_src>
import jax
import jax.numpy as jnp
from jax.experimental import pallas as pl
from jax.experimental.pallas import tpu as pltpu


def _round_up(n, m):
    return ((n + m - 1) // m) * m


def mlp_kernel(x_ref, w1_ref, b1_ref, w2_ref, b2_ref, w3_ref, b3_ref, o_ref):
    """One batch tile.  x: (4, TB) with batch on the lane axis; o: (3, TB)."""
    cdt = x_ref.dtype  # MXU operand dtype (bf16 by default, f32 optional)

    # fc1 + ReLU : (16,4) @ (4,TB) + (16,1); f32 accumulation on the MXU,
    # bias broadcasts along lanes.
    h1 = jnp.dot(w1_ref[...], x_ref[...], preferred_element_type=jnp.float32)
    h1 = jnp.maximum(h1 + b1_ref[...], 0.0).astype(cdt)

    # fc2 + ReLU : (16,16) @ (16,TB) + (16,1)
    h2 = jnp.dot(w2_ref[...], h1, preferred_element_type=jnp.float32)
    h2 = jnp.maximum(h2 + b2_ref[...], 0.0).astype(cdt)

    # fc3 : (3,16) @ (16,TB) + (3,1) -- lane-dense f32 store.
    o = jnp.dot(w3_ref[...], h2, preferred_element_type=jnp.float32) + b3_ref[...]
    o_ref[...] = o.astype(o_ref.dtype)


def net_forward_fm(xt, params, *, batch_tile=65536, compute_dtype=jnp.bfloat16):
    """Feature-major forward: xt (4, B) any float dtype -> (3, B) float32.

    Preferred (hot-path) entry point: no layout round trips in the wrapper.
    params = (w1, b1, w2, b2, w3, b3), weights (out, in), biases (out,).
    """
    w1, b1, w2, b2, w3, b3 = params
    in_f, B = xt.shape
    assert in_f == 4, "expected feature-major input of shape (4, B)"

    # MXU operands in compute_dtype; biases added in f32 after accumulation.
    w1c = w1.astype(compute_dtype)
    w2c = w2.astype(compute_dtype)
    w3c = w3.astype(compute_dtype)
    b1c = b1.reshape(-1, 1).astype(jnp.float32)
    b2c = b2.reshape(-1, 1).astype(jnp.float32)
    b3c = b3.reshape(-1, 1).astype(jnp.float32)

    # Lane-aligned batch tiling with bounded padding: choose the step count
    # first, then size the tile, so padding stays < 128 columns per step.
    requested = max(128, _round_up(int(batch_tile), 128))
    Bp = _round_up(B, 128)
    n_steps = pl.cdiv(Bp, requested)
    if Bp >= 256:
        # At least 2 steps so v7x's two TensorCores both get work.
        n_steps = max(n_steps, 2)
    TB = _round_up(pl.cdiv(Bp, n_steps), 128)
    Bp = TB * n_steps

    xp = xt.astype(compute_dtype)
    if Bp != B:
        xp = jnp.pad(xp, ((0, 0), (0, Bp - B)))  # padded cols sliced off below

    # Double-buffered (4,TB)+(3,TB) tiles are ~4-8 MiB at the default TB=64K,
    # inside every generation's default scoped VMEM; only ask for more when a
    # caller sweeps bigger tiles (48 MiB is still safe on v7x's 64 MiB VMEM).
    vmem_limit = None if TB <= 65536 else 48 * 1024 * 1024

    out = pl.pallas_call(
        mlp_kernel,
        out_shape=jax.ShapeDtypeStruct((3, Bp), jnp.float32),
        grid_spec=pltpu.PrefetchScalarGridSpec(
            num_scalar_prefetch=0,
            grid=(n_steps,),
            in_specs=[
                # Batch-tiled input: pipelined / double-buffered per step.
                pl.BlockSpec((4, TB), lambda i: (0, i)),
                # Weights / biases: constant index_map -> DMA'd once,
                # VMEM-resident across the whole grid.
                pl.BlockSpec(w1c.shape, lambda i: (0, 0)),
                pl.BlockSpec(b1c.shape, lambda i: (0, 0)),
                pl.BlockSpec(w2c.shape, lambda i: (0, 0)),
                pl.BlockSpec(b2c.shape, lambda i: (0, 0)),
                pl.BlockSpec(w3c.shape, lambda i: (0, 0)),
                pl.BlockSpec(b3c.shape, lambda i: (0, 0)),
            ],
            out_specs=pl.BlockSpec((3, TB), lambda i: (0, i)),
        ),
        compiler_params=pltpu.CompilerParams(
            dimension_semantics=("parallel",),
            vmem_limit_bytes=vmem_limit,
        ),
    )(xp, w1c, b1c, w2c, b2c, w3c, b3c)

    return out if Bp == B else out[:, :B]


def net_forward(x, params, *, batch_tile=65536, compute_dtype=jnp.bfloat16):
    """PyTorch-facing contract: x (B, 4) -> (B, 3).

    Thin compatibility wrapper (one transpose each way); prefer
    `net_forward_fm` on hot paths to avoid the layout round trips.
    """
    return net_forward_fm(
        x.T, params, batch_tile=batch_tile, compute_dtype=compute_dtype
    ).T


def init_params(key):
    """Deterministic init matching PyTorch Linear: W (out, in), b (out,)."""
    ks = jax.random.split(key, 6)

    def uniform(k, shape, fan_in):
        bound = 1.0 / jnp.sqrt(fan_in)
        return jax.random.uniform(k, shape, jnp.float32, -bound, bound)

    w1 = uniform(ks[0], (16, 4), 4.0)
    b1 = uniform(ks[1], (16,), 4.0)
    w2 = uniform(ks[2], (16, 16), 16.0)
    b2 = uniform(ks[3], (16,), 16.0)
    w3 = uniform(ks[4], (3, 16), 16.0)
    b3 = uniform(ks[5], (3,), 16.0)
    return (w1, b1, w2, b2, w3, b3)


def net_forward_ref_f32(x, params):
    """Pure-JAX f32 reference (exact PyTorch semantics)."""
    w1, b1, w2, b2, w3, b3 = params
    h = jnp.maximum(x @ w1.T + b1, 0.0)
    h = jnp.maximum(h @ w2.T + b2, 0.0)
    return h @ w3.T + b3


def net_forward_ref_bf16(x, params, compute_dtype=jnp.bfloat16):
    """Reference emulating the kernel numerics: bf16 operands, f32 accumulation."""
    w1, b1, w2, b2, w3, b3 = params
    h = x.astype(compute_dtype)
    h = jnp.maximum(
        jnp.dot(h, w1.T.astype(compute_dtype), preferred_element_type=jnp.float32)
        + b1, 0.0).astype(compute_dtype)
    h = jnp.maximum(
        jnp.dot(h, w2.T.astype(compute_dtype), preferred_element_type=jnp.float32)
        + b2, 0.0).astype(compute_dtype)
    return (jnp.dot(h, w3.T.astype(compute_dtype), preferred_element_type=jnp.float32)
            + b3)


if __name__ == "__main__":
    key = jax.random.PRNGKey(0)
    pkey, xkey, xkey2 = jax.random.split(key, 3)

    params = init_params(pkey)

    # Small primary test: batch=8, in_features=4 (single grid step).
    x = jax.random.normal(xkey, (8, 4), jnp.float32)
    out = jax.block_until_ready(net_forward(x, params))
    assert out.shape == (8, 3)
    ref_bf = net_forward_ref_bf16(x, params)
    ref_f32 = net_forward_ref_f32(x, params)
    assert jnp.allclose(out, ref_bf, atol=2e-2, rtol=2e-2), "mismatch vs bf16 reference (B=8)"
    # bf16 MXU operands introduce ~1e-2-level error vs pure-f32 semantics.
    assert jnp.allclose(out, ref_f32, atol=2.5e-1, rtol=5e-2), "mismatch vs f32 reference (B=8)"

    # Second test exercising padding (1000 -> 1024) and a multi-step grid.
    x2 = jax.random.normal(xkey2, (1000, 4), jnp.float32)
    out2 = jax.block_until_ready(net_forward(x2, params, batch_tile=256))
    assert out2.shape == (1000, 3)
    ref2_bf = net_forward_ref_bf16(x2, params)
    ref2_f32 = net_forward_ref_f32(x2, params)
    assert jnp.allclose(out2, ref2_bf, atol=2e-2, rtol=2e-2), "mismatch vs bf16 reference (B=1000)"
    assert jnp.allclose(out2, ref2_f32, atol=2.5e-1, rtol=5e-2), "mismatch vs f32 reference (B=1000)"

    # Feature-major hot path (no wrapper transposes), default 64K tile.
    out3 = jax.block_until_ready(net_forward_fm(x2.T, params))
    assert out3.shape == (3, 1000)
    assert jnp.allclose(out3.T, ref2_bf, atol=2e-2, rtol=2e-2), "mismatch vs bf16 reference (fm path)"

    print("KERNEL_OK")
</pallas_src>

<mosaic_0001>
module attributes {stable_mosaic.version = 11 : i64} {
  func.func @mlp_kernel(%arg0: i32, %arg1: memref<4x128xbf16, #tpu.memory_space<vmem>>, %arg2: memref<16x4xbf16, #tpu.memory_space<vmem>>, %arg3: memref<16x1xf32, #tpu.memory_space<vmem>>, %arg4: memref<16x16xbf16, #tpu.memory_space<vmem>>, %arg5: memref<16x1xf32, #tpu.memory_space<vmem>>, %arg6: memref<3x16xbf16, #tpu.memory_space<vmem>>, %arg7: memref<3x1xf32, #tpu.memory_space<vmem>>, %arg8: memref<3x128xf32, #tpu.memory_space<vmem>>) attributes {dimension_semantics = [#tpu.dimension_semantics<parallel>], iteration_bounds = array<i64: 1>, scalar_prefetch = 0 : i64, scratch_operands = 0 : i64, tpu.core_type = #tpu.core_type<tc>, window_params = [{transform_indices = @transform_0, window_bounds = array<i64: 4, 128>}, {pipeline_mode = #tpu.pipeline_mode<synchronous>, transform_indices = @transform_1, window_bounds = array<i64: 16, 4>}, {pipeline_mode = #tpu.pipeline_mode<synchronous>, transform_indices = @transform_2, window_bounds = array<i64: 16, 1>}, {pipeline_mode = #tpu.pipeline_mode<synchronous>, transform_indices = @transform_3, window_bounds = array<i64: 16, 16>}, {pipeline_mode = #tpu.pipeline_mode<synchronous>, transform_indices = @transform_4, window_bounds = array<i64: 16, 1>}, {pipeline_mode = #tpu.pipeline_mode<synchronous>, transform_indices = @transform_5, window_bounds = array<i64: 3, 16>}, {pipeline_mode = #tpu.pipeline_mode<synchronous>, transform_indices = @transform_6, window_bounds = array<i64: 3, 1>}, {transform_indices = @transform_7, window_bounds = array<i64: 3, 128>}]} {
    %c0 = arith.constant 0 : index
    %c0_0 = arith.constant 0 : index
    %0 = vector.load %arg2[%c0, %c0_0] : memref<16x4xbf16, #tpu.memory_space<vmem>>, vector<16x4xbf16>
    %c0_1 = arith.constant 0 : index
    %c0_2 = arith.constant 0 : index
    %1 = vector.load %arg1[%c0_1, %c0_2] : memref<4x128xbf16, #tpu.memory_space<vmem>>, vector<4x128xbf16>
    %cst = arith.constant dense<0.000000e+00> : vector<16x128xf32>
    %2 = tpu.matmul %0, %1, %cst {dimension_numbers = #tpu.dot_dimension_numbers<[1], [0], [0], [1], [0, 0, 1, 1], [], []>} : vector<16x4xbf16>, vector<4x128xbf16>, vector<16x128xf32> -> vector<16x128xf32>
    %c0_3 = arith.constant 0 : index
    %c0_4 = arith.constant 0 : index
    %3 = vector.load %arg3[%c0_3, %c0_4] : memref<16x1xf32, #tpu.memory_space<vmem>>, vector<16x1xf32>
    %4 = vector.broadcast %3 : vector<16x1xf32> to vector<16x128xf32>
    %5 = arith.addf %2, %4 : vector<16x128xf32>
    %cst_5 = arith.constant 0.000000e+00 : f32
    %6 = vector.broadcast %cst_5 : f32 to vector<16x128xf32>
    %7 = arith.maximumf %5, %6 : vector<16x128xf32>
    %8 = arith.truncf %7 : vector<16x128xf32> to vector<16x128xbf16>
    %c0_6 = arith.constant 0 : index
    %c0_7 = arith.constant 0 : index
    %9 = vector.load %arg4[%c0_6, %c0_7] : memref<16x16xbf16, #tpu.memory_space<vmem>>, vector<16x16xbf16>
    %cst_8 = arith.constant dense<0.000000e+00> : vector<16x128xf32>
    %10 = tpu.matmul %9, %8, %cst_8 {dimension_numbers = #tpu.dot_dimension_numbers<[1], [0], [0], [1], [0, 0, 1, 1], [], []>} : vector<16x16xbf16>, vector<16x128xbf16>, vector<16x128xf32> -> vector<16x128xf32>
    %c0_9 = arith.constant 0 : index
    %c0_10 = arith.constant 0 : index
    %11 = vector.load %arg5[%c0_9, %c0_10] : memref<16x1xf32, #tpu.memory_space<vmem>>, vector<16x1xf32>
    %12 = vector.broadcast %11 : vector<16x1xf32> to vector<16x128xf32>
    %13 = arith.addf %10, %12 : vector<16x128xf32>
    %cst_11 = arith.constant 0.000000e+00 : f32
    %14 = vector.broadcast %cst_11 : f32 to vector<16x128xf32>
    %15 = arith.maximumf %13, %14 : vector<16x128xf32>
    %16 = arith.truncf %15 : vector<16x128xf32> to vector<16x128xbf16>
    %c0_12 = arith.constant 0 : index
    %c0_13 = arith.constant 0 : index
    %17 = vector.load %arg6[%c0_12, %c0_13] : memref<3x16xbf16, #tpu.memory_space<vmem>>, vector<3x16xbf16>
    %cst_14 = arith.constant dense<0.000000e+00> : vector<3x128xf32>
    %18 = tpu.matmul %17, %16, %cst_14 {dimension_numbers = #tpu.dot_dimension_numbers<[1], [0], [0], [1], [0, 0, 1, 1], [], []>} : vector<3x16xbf16>, vector<16x128xbf16>, vector<3x128xf32> -> vector<3x128xf32>
    %c0_15 = arith.constant 0 : index
    %c0_16 = arith.constant 0 : index
    %19 = vector.load %arg7[%c0_15, %c0_16] : memref<3x1xf32, #tpu.memory_space<vmem>>, vector<3x1xf32>
    %20 = vector.broadcast %19 : vector<3x1xf32> to vector<3x128xf32>
    %21 = arith.addf %18, %20 : vector<3x128xf32>
    %c0_17 = arith.constant 0 : index
    %c0_18 = arith.constant 0 : index
    %22 = vector.load %arg8[%c0_17, %c0_18] : memref<3x128xf32, #tpu.memory_space<vmem>>, vector<3x128xf32>
    tpu.vector_store %arg8[%c0_17, %c0_18], %21 {strides = array<i32>} : memref<3x128xf32, #tpu.memory_space<vmem>>, vector<3x128xf32>,
    return
  }
  func.func @transform_0(%arg0: i32) -> (i32, i32) {
    %c0_i32 = arith.constant 0 : i32
    %c0_i32_0 = arith.constant 0 : i32
    return %c0_i32, %arg0 : i32, i32
  }
  func.func @transform_1(%arg0: i32) -> (i32, i32) {
    %c0_i32 = arith.constant 0 : i32
    %c0_i32_0 = arith.constant 0 : i32
    %c0_i32_1 = arith.constant 0 : i32
    return %c0_i32, %c0_i32_0 : i32, i32
  }
  func.func @transform_2(%arg0: i32) -> (i32, i32) {
    %c0_i32 = arith.constant 0 : i32
    %c0_i32_0 = arith.constant 0 : i32
    %c0_i32_1 = arith.constant 0 : i32
    return %c0_i32, %c0_i32_0 : i32, i32
  }
  func.func @transform_3(%arg0: i32) -> (i32, i32) {
    %c0_i32 = arith.constant 0 : i32
    %c0_i32_0 = arith.constant 0 : i32
    %c0_i32_1 = arith.constant 0 : i32
    return %c0_i32, %c0_i32_0 : i32, i32
  }
  func.func @transform_4(%arg0: i32) -> (i32, i32) {
    %c0_i32 = arith.constant 0 : i32
    %c0_i32_0 = arith.constant 0 : i32
    %c0_i32_1 = arith.constant 0 : i32
    return %c0_i32, %c0_i32_0 : i32, i32
  }
  func.func @transform_5(%arg0: i32) -> (i32, i32) {
    %c0_i32 = arith.constant 0 : i32
    %c0_i32_0 = arith.constant 0 : i32
    %c0_i32_1 = arith.constant 0 : i32
    return %c0_i32, %c0_i32_0 : i32, i32
  }
  func.func @transform_6(%arg0: i32) -> (i32, i32) {
    %c0_i32 = arith.constant 0 : i32
    %c0_i32_0 = arith.constant 0 : i32
    %c0_i32_1 = arith.constant 0 : i32
    return %c0_i32, %c0_i32_0 : i32, i32
  }
  func.func @transform_7(%arg0: i32) -> (i32, i32) {
    %c0_i32 = arith.constant 0 : i32
    %c0_i32_0 = arith.constant 0 : i32
    return %c0_i32, %arg0 : i32, i32
  }
}

</mosaic_0001>

<bundles_post_ra>
// kernel: tpu_custom_call.1
= control target key start
LH: loop header
LB: loop body
LE: loop exit
PB: predicated region body
PF: predicated region fallthrough
CT: control target
= control target key end

     0   :  { %vm52_vm0 = vcmask 1041408   ;;  %v293_v1 = vmov 0.0   ;;  %vm294_vm1 = vmmov 0   ;;  %vm48_vm2 = vcmask 31744   ;;  %s379_s0 = inlined_call_operand.vmem [shape: bf16[4,128], index: 0, kind: input, shape index: {}]   ;;  %s380_s1 = inlined_call_operand.vmem [shape: bf16[16,4], index: 1, kind: input, shape index: {}]   ;;  %s381_s2 = inlined_call_operand.vmem [shape: f32[16,1], index: 2, kind: input, shape index: {}]   ;;  %s382_s3 = inlined_call_operand.vmem [shape: bf16[16,16], index: 3, kind: input, shape index: {}]   ;;  %s383_s4 = inlined_call_operand.vmem [shape: f32[16,1], index: 4, kind: input, shape index: {}]   ;;  %s384_s5 = inlined_call_operand.vmem [shape: bf16[3,16], index: 5, kind: input, shape index: {}]   ;;  %s385_s6 = inlined_call_operand.vmem [shape: f32[3,1], index: 6, kind: input, shape index: {}]   ;;  %s386_s7 = inlined_call_operand.hbm [shape: f32[3,128], index: 7, kind: output, shape index: {}]  }
   0x1   :  { %v30_v0 = vld [vmem:[%s379_s0] sm:$0x3]  ;;  %243 = vmatprep.subr.bf16.mxu0 %v293_v1  ;;  %245 = vmatprep.mubr.msk.bf16.mxu0 %vm294_vm1, %v293_v1  ;;  %v295_v5 = vmov 0  }
   0x2   :  { %v54_v2 = vsel %vm52_vm0, %v30_v0, 0  ;;  %v267_v3 = vld [vmem:[%s380_s1] sm:$0xff]   ;;  %249 = vmatprep.subr.bf16.mxu1 %v293_v1  ;;  %265 = vset.pattern.permute.xlu0 %v295_v5 }
   0x3   :  { %244 = vmatpush3.bf16.msra.mxu0 %v54_v2  ;;  %v31_v4 = vld [vmem:[%s381_s2] sm:$0xff]  ;;  %251 = vmatprep.mubr.msk.bf16.mxu1 %vm294_vm1, %v293_v1 }
   0x4   :  { %12 = vsyncpa [#allocation3], 0  ;;  %35 = vperm.xlu0 %265, %v31_v4   ;;  %266 = vset.pattern.permute.xlu1 %v295_v5  ;;  %v32_v6 = vld [vmem:[%s381_s2 + $0x8] sm:$0xff]  ;;  %v168_v7 = vld [vmem:[%s385_s6] sm:$0x7]  ;;  %vm119_vm3 = vcmask 130048  }
   0x5   :  { %255 = vmatprep.subr.bf16.mxu0 %v293_v1  ;;  %v102_v8 = vld [vmem:[%s383_s4] sm:$0xff]  ;;  %v103_v9 = vld [vmem:[%s383_s4 + $0x8] sm:$0xff] }
   0x6   :  { %246 = vmatmul.mubr.msk.bf16.vlgmr.msra.gmra.mrb[0].mxu0 %vm48_vm2, %v267_v3  ;;  %106 = vperm.xlu1 %266, %v102_v8   ;;  %v268_v21 = vld [vmem:[%s382_s3] sm:$0xff]   ;;  %s296_s3 = smov [#allocation2]  }
   0x7   :  { %257 = vmatprep.mubr.msk.bf16.mxu0 %vm294_vm1, %v293_v1  ;;  %v167_v33 = vld [vmem:[%s384_s5] sm:$0x3]  ;;  %s224_s14 = sshll.u32 %s296_s3, 4  ;;  %s225_s14 = int_to_ptr.vmem [resolvable:$true] %s224_s14 }
   0x8   :  { %40 = vperm.xlu0 %265, %v32_v6   ;;  %s269_s15 = scalar_lea.vmem %s225_s14, 64  ;;  %p274_p1 = scmp.lt.s32.totalorder %s225_s14, %s225_s14 }
   0x9   :  { %p270_p0 = scmp.ne.s32.totalorder %s225_s14, %s269_s15  ;;  %p275_p2 = scmp.lt.s32.totalorder %s269_s15, %s269_s15 }
   0xa   :  { %111 = vperm.xlu1 %266, %v103_v9  }
   0xb   :  { %p276_p3 = por %p275_p2, %p274_p1 }
   0xc   :  { %171 = vperm.xlu0 %265, %v168_v7  }
   0xd   :  { %p277_p4 = pnand %p276_p3, %p270_p0 }
  0x83   :  { %v36_v10 = vpop.permute.xlu0 %35 }
  0x85   :  { %v107_v22 = vpop.permute.xlu1 %106 }
  0x87   :  { %v41_v14 = vpop.permute.xlu0 %40 }
  0x89   :  { %v112_v26 = vpop.permute.xlu1 %111 }
  0x8b   :  { %v172_v34 = vpop.permute.xlu0 %171 }
  0xd9   :  { %v90_v11 = vpop.f32.mrb[0].mxu0 }
  0xda   :  { %v91_v12 = vadd.f32 %v90_v11, %v36_v10  ;;  %v247_v13 = vpop.f32.mrb[1].mxu0 }
  0xdb   :  { %v93_v15 = vpop.f32.mrb[2].mxu0 }
  0xdc   :  { %v94_v16 = vadd.f32 %v93_v15, %v41_v14  ;;  %v248_v17 = vpop.f32.mrb[3].mxu0  ;;  %v97_v18 = vmax.f32 %v91_v12, 0.0 }
  0xde   :  { %v98_v19 = vmax.f32 %v94_v16, 0.0 }
  0xe0   :  { %v99_v20 = vpack.c.bf16 %v98_v19, %v97_v18 }
  0xe2   :  { %250 = vmatpush3.bf16.msra.mxu1 %v99_v20 }
  0xe5   :  { %252 = vmatmul.mubr.msk.bf16.vlgmr.msra.gmra.mrb[0].mxu1 %vm119_vm3, %v268_v21 }
 0x1b8   :  { %v157_v23 = vpop.f32.mrb[0].mxu1 }
 0x1b9   :  { %v158_v24 = vadd.f32 %v157_v23, %v107_v22  ;;  %v253_v25 = vpop.f32.mrb[1].mxu1 }
 0x1ba   :  { %v160_v27 = vpop.f32.mrb[2].mxu1 }
 0x1bb   :  { %v161_v28 = vadd.f32 %v160_v27, %v112_v26  ;;  %v254_v29 = vpop.f32.mrb[3].mxu1  ;;  %v164_v30 = vmax.f32 %v158_v24, 0.0 }
 0x1bd   :  { %v165_v31 = vmax.f32 %v161_v28, 0.0 }
 0x1bf   :  { %v166_v32 = vpack.c.bf16 %v165_v31, %v164_v30 }
 0x1c1   :  { %256 = vmatpush3.bf16.msra.mxu0 %v166_v32 }
 0x1c4   :  { %258 = vmatmul.mubr.msk.bf16.vlgmr.msra.gmra.mrb[4].mxu0 %vm119_vm3, %v167_v33 }
 0x297   :  { %v211_v35 = vpop.f32.mrb[4].mxu0 }
 0x298   :  { %v212_v36 = vadd.f32 %v211_v35, %v172_v34  ;;  %v259_v37 = vpop.f32.mrb[5].mxu0 }
 0x299   :  { %v214_v38 = vpop.f32.mrb[6].mxu0 }
 0x29a   :  { %217 = vst [vmem:[#allocation2] sm:$0x7] %v212_v36  ;;  %v260_v39 = vpop.f32.mrb[7].mxu0 }
 0x29b   :  { %280 = shalt.err (!%p277_p4)
}
 0x29c   :  { %s281_s17 = scalar_lea.hbm %s386_s7, 64 }
 0x29d   :  { %p282_p5 = scmp.ne.s32.totalorder %s386_s7, %s281_s17  ;;  %p285_p6 = scmp.lt.u32.totalorder %s281_s17, %s386_s7 }
 0x29f   :  { %p287_p7 = pnand %p285_p6, %p282_p5 }
 0x2a1   :  { %290 = shalt.err (!%p287_p7)
}
 0x2a2   :  { %227 = dma.vmem_to_hbm [thread:$0]  %s225_s14, 64, %s386_s7, [#allocation3]  }
 0x2a3   :  { %291 = dma.done.wait [#allocation3], 64  }
 0x2a4   :  { %292 = vsyncadd [#allocation3], 4294967232 }
 0x2a5   :  { %231 = vsyncpa [#allocation3], 1 }

</bundles_post_ra>
